<compile_context>
chip_gen: v7x
topology: tpu7x:2x2x1
jax: 0.10.0
libtpu: 0.0.40
codegen_flags: <defaults>
</compile_context>

<pallas_src>
import numpy as np
import jax
import jax.numpy as jnp
from jax.experimental import pallas as pl
from jax.experimental.pallas import tpu as pltpu


# ---------------------------------------------------------------------------
# Fused kernel: per image, conv1..conv3 (k=4, s=2, p=1, LeakyReLU 0.2) + conv4
# ---------------------------------------------------------------------------
def _critic_kernel(a1_ref, g1_ref, b1_ref, g2_ref, b2_ref, g3_ref, b3_ref,
                   w4_ref, b4_ref, o_ref, buf1, buf2, buf3):
    def store_padded(buf_ref, val):
        # buf_ref: (H+2, L) f32 scratch; rows 0 and H+1 are the zero H-padding.
        h, l = val.shape
        zero = jnp.zeros((1, l), jnp.float32)
        buf_ref[0:1, :] = zero
        buf_ref[1:1 + h, :] = val
        buf_ref[1 + h:2 + h, :] = zero

    def conv_block(buf_ref, g_ref, b_ref):
        # 4x4 stride-2 pad-1 conv as: strided row-tap gather -> lane concat
        # -> ONE (Hout, 512) x (512, 128) bf16 matmul with f32 accumulation.
        h_in = buf_ref.shape[0] - 2
        h_out = h_in // 2
        taps = [buf_ref[pl.ds(ki, h_out, stride=2), :] for ki in range(4)]
        gathered = jnp.concatenate(taps, axis=1).astype(jnp.bfloat16)
        y = jnp.dot(gathered, g_ref[...], preferred_element_type=jnp.float32)
        y = y + b_ref[...]                           # bias (f32)
        return jnp.where(y >= 0.0, y, 0.2 * y)       # LeakyReLU(0.2)

    # Layer 1..3: intermediates never leave the core.
    store_padded(buf1, a1_ref[...])                  # (34, 128) padded input
    y1 = conv_block(buf1, g1_ref, b1_ref)            # (16, 128)
    store_padded(buf2, y1)
    y2 = conv_block(buf2, g2_ref, b2_ref)            # (8, 128)
    store_padded(buf3, y2)
    y3 = conv_block(buf3, g3_ref, b3_ref)            # (4, 128)

    # conv4: 4x4 valid conv -> scalar.  VPU multiply + reductions only
    # (no trailing MXU push on the serial tail).
    t = y3 * w4_ref[...]                             # (4, 128) f32
    r = jnp.sum(t, axis=1, keepdims=True)            # (4, 1)  lane reduce
    s = jnp.sum(r, axis=0, keepdims=True)            # (1, 1)  sublane reduce
    o_ref[...] = s + b4_ref[0, 0]                    # + scalar bias (SMEM)


# ---------------------------------------------------------------------------
# Parameters (PyTorch Conv2d-equivalent init) and one-time preprocessing
# ---------------------------------------------------------------------------
def init_critic_params(key, i_dim, h_dim):
    dims = [(h_dim, i_dim), (2 * h_dim, h_dim), (4 * h_dim, 2 * h_dim),
            (1, 4 * h_dim)]
    params = []
    for cout, cin in dims:
        key, kw_, kb_ = jax.random.split(key, 3)
        bound = 1.0 / np.sqrt(cin * 16)              # fan_in = cin * 4 * 4
        w = jax.random.uniform(kw_, (cout, cin, 4, 4), jnp.float32,
                               -bound, bound)
        b = jax.random.uniform(kb_, (cout,), jnp.float32, -bound, bound)
        params.append((w, b))
    return params


def prepare_critic_params(params, spatial):
    """Precompute stacked banded weight matrices (batch-independent, done once).

    Layer i: Gstack[ki*L + wc*Cin + ci, wo*Cout + co] = W[co, ci, ki, kj]
    with wc = 2*wo + kj - 1 (zero elsewhere), L = W_in*Cin = 128 lanes.
    """
    # TODO(synk): the conv4 epilogue assumes a 4x4 final feature map
    # (spatial == 32); other sizes need a general final conv block.
    assert spatial == 32, "Critic kernel expects 32x32 input images"
    np_params = [(np.asarray(w), np.asarray(b)) for (w, b) in params]

    layers = []
    h = spatial                                       # square feature maps
    for (w, b) in np_params[:3]:
        cout, cin, kh, kw = w.shape
        h_out = h // 2
        lanes_in, lanes_out = h * cin, h_out * cout
        assert lanes_in == 128 and lanes_out == 128, (
            "lane-dense layout requires W*Cin == Wout*Cout == 128 "
            "(use i_dim=4, h_dim=8, spatial=32)")
        g = np.zeros((kh, lanes_in, lanes_out), np.float32)
        for ki in range(kh):
            for kj in range(kw):
                for wo in range(h_out):
                    wc = 2 * wo + kj - 1
                    if 0 <= wc < h:
                        g[ki, wc * cin:(wc + 1) * cin,
                          wo * cout:(wo + 1) * cout] = w[:, :, ki, kj].T
        gstack = g.reshape(kh * lanes_in, lanes_out)          # (512, 128)
        brow = np.tile(b, h_out)[None, :]                     # (1, 128)
        layers.append((jnp.asarray(gstack, jnp.bfloat16),
                       jnp.asarray(brow, jnp.float32)))
        h = h_out

    w4, b4 = np_params[3]                             # (1, 4*h_dim, 4, 4)
    cout4, cin4, kh4, kw4 = w4.shape
    assert cout4 == 1 and kh4 == h and kw4 == h and kw4 * cin4 == 128
    # w4slab[i, j*Cin + c] = W4[0, c, i, j]
    w4slab = np.transpose(w4[0], (1, 2, 0)).reshape(kh4, kw4 * cin4)
    return {
        "layers": layers,
        "w4": jnp.asarray(w4slab, jnp.float32),                # (4, 128)
        "b4": jnp.asarray(b4.reshape(1, 1), np.float32),       # scalar (SMEM)
    }


# ---------------------------------------------------------------------------
# Forward pass: one pallas_call, grid over batch (parallel)
# ---------------------------------------------------------------------------
def critic_forward(x_nchw, prepped):
    B, Ci, H, W = x_nchw.shape
    # NCHW -> per-image lane-dense slab: rows = h, lanes = w*Ci + c.
    a1 = jnp.transpose(x_nchw, (0, 2, 3, 1)).reshape(B, H, W * Ci)

    (g1, b1), (g2, b2), (g3, b3) = prepped["layers"]
    w4, b4 = prepped["w4"], prepped["b4"]

    l1_in = g1.shape[0] // 4      # 128 input lanes of layer 1
    l1_out = g1.shape[1]          # 128
    l2_out = g2.shape[1]          # 128

    const_spec = lambda shape: pl.BlockSpec(shape, lambda b: (0, 0))

    out = pl.pallas_call(
        _critic_kernel,
        out_shape=jax.ShapeDtypeStruct((B, 1, 1), jnp.float32),
        grid=(B,),
        in_specs=[
            pl.BlockSpec((None, H, W * Ci), lambda b: (b, 0, 0)),   # image slab
            const_spec(g1.shape), const_spec(b1.shape),
            const_spec(g2.shape), const_spec(b2.shape),
            const_spec(g3.shape), const_spec(b3.shape),
            const_spec(w4.shape),
            pl.BlockSpec(memory_space=pltpu.MemorySpace.SMEM),      # b4 scalar
        ],
        out_specs=pl.BlockSpec((None, 1, 1), lambda b: (b, 0, 0)),
        scratch_shapes=[
            pltpu.VMEM((H + 2, l1_in), jnp.float32),        # padded layer-1 in
            pltpu.VMEM((H // 2 + 2, l1_out), jnp.float32),  # padded layer-2 in
            pltpu.VMEM((H // 4 + 2, l2_out), jnp.float32),  # padded layer-3 in
        ],
        compiler_params=pltpu.CompilerParams(
            dimension_semantics=("parallel",),     # batch axis -> 2 TCs on v7x
            vmem_limit_bytes=32 * 1024 * 1024,     # fits v5e/v6e/v7x budgets
        ),
    )(a1, g1, b1, g2, b2, g3, b3, w4, b4)

    # PyTorch `.squeeze()` on the (B, 1, 1, 1) conv output
    return jnp.squeeze(out)


# ---------------------------------------------------------------------------
if __name__ == "__main__":
    i_dim, h_dim = 4, 8
    B, S = 2, 32          # 32 -> 16 -> 8 -> 4 -> 1 through the four convs

    key = jax.random.PRNGKey(0)
    k_in, k_par = jax.random.split(key)
    x = jax.random.normal(k_in, (B, i_dim, S, S), jnp.float32)   # NCHW input
    params = init_critic_params(k_par, i_dim, h_dim)
    prepped = prepare_critic_params(params, spatial=S)

    out = jax.jit(critic_forward)(x, prepped)
    jax.block_until_ready(out)

    assert out.shape == (B,), out.shape
    assert bool(jnp.all(jnp.isfinite(out)))
    print("KERNEL_OK")
</pallas_src>

<mosaic_0001>
module attributes {stable_mosaic.version = 11 : i64} {
  func.func @_critic_kernel(%arg0: i32, %arg1: memref<1x32x128xf32, #tpu.memory_space<vmem>>, %arg2: memref<512x128xbf16, #tpu.memory_space<vmem>>, %arg3: memref<1x128xf32, #tpu.memory_space<vmem>>, %arg4: memref<512x128xbf16, #tpu.memory_space<vmem>>, %arg5: memref<1x128xf32, #tpu.memory_space<vmem>>, %arg6: memref<512x128xbf16, #tpu.memory_space<vmem>>, %arg7: memref<1x128xf32, #tpu.memory_space<vmem>>, %arg8: memref<4x128xf32, #tpu.memory_space<vmem>>, %arg9: memref<1x1xf32, #tpu.memory_space<smem>>, %arg10: memref<1x1x1xf32, #tpu.memory_space<vmem>>, %arg11: memref<34x128xf32, #tpu.memory_space<vmem>>, %arg12: memref<18x128xf32, #tpu.memory_space<vmem>>, %arg13: memref<10x128xf32, #tpu.memory_space<vmem>>) attributes {dimension_semantics = [#tpu.dimension_semantics<parallel>], iteration_bounds = array<i64: 2>, scalar_prefetch = 0 : i64, scratch_operands = 3 : i64, tpu.core_type = #tpu.core_type<tc>, window_params = [{transform_indices = @transform_0, window_bounds = array<i64: 1, 32, 128>}, {pipeline_mode = #tpu.pipeline_mode<synchronous>, transform_indices = @transform_1, window_bounds = array<i64: 512, 128>}, {pipeline_mode = #tpu.pipeline_mode<synchronous>, transform_indices = @transform_2, window_bounds = array<i64: 1, 128>}, {pipeline_mode = #tpu.pipeline_mode<synchronous>, transform_indices = @transform_3, window_bounds = array<i64: 512, 128>}, {pipeline_mode = #tpu.pipeline_mode<synchronous>, transform_indices = @transform_4, window_bounds = array<i64: 1, 128>}, {pipeline_mode = #tpu.pipeline_mode<synchronous>, transform_indices = @transform_5, window_bounds = array<i64: 512, 128>}, {pipeline_mode = #tpu.pipeline_mode<synchronous>, transform_indices = @transform_6, window_bounds = array<i64: 1, 128>}, {pipeline_mode = #tpu.pipeline_mode<synchronous>, transform_indices = @transform_7, window_bounds = array<i64: 4, 128>}, {transform_indices = @transform_8, window_bounds = array<i64: 1, 1>}, {transform_indices = @transform_9, window_bounds = array<i64: 1, 1, 1>}]} {
    %c0 = arith.constant 0 : index
    %c0_0 = arith.constant 0 : index
    %c0_1 = arith.constant 0 : index
    %0 = vector.load %arg1[%c0, %c0_0, %c0_1] : memref<1x32x128xf32, #tpu.memory_space<vmem>>, vector<1x32x128xf32>
    %1 = vector.shape_cast %0 : vector<1x32x128xf32> to vector<32x128xf32>
    %cst = arith.constant 0.000000e+00 : f32
    %2 = vector.broadcast %cst : f32 to vector<1x128xf32>
    %c0_2 = arith.constant 0 : index
    %c0_3 = arith.constant 0 : index
    %3 = vector.load %arg11[%c0_2, %c0_3] : memref<34x128xf32, #tpu.memory_space<vmem>>, vector<1x128xf32>
    tpu.vector_store %arg11[%c0_2, %c0_3], %2 {strides = array<i32>} : memref<34x128xf32, #tpu.memory_space<vmem>>, vector<1x128xf32>,
    %c1 = arith.constant 1 : index
    %c0_4 = arith.constant 0 : index
    %4 = vector.load %arg11[%c1, %c0_4] : memref<34x128xf32, #tpu.memory_space<vmem>>, vector<32x128xf32>
    tpu.vector_store %arg11[%c1, %c0_4], %1 {strides = array<i32>} : memref<34x128xf32, #tpu.memory_space<vmem>>, vector<32x128xf32>,
    %c33 = arith.constant 33 : index
    %c0_5 = arith.constant 0 : index
    %5 = vector.load %arg11[%c33, %c0_5] : memref<34x128xf32, #tpu.memory_space<vmem>>, vector<1x128xf32>
    tpu.vector_store %arg11[%c33, %c0_5], %2 {strides = array<i32>} : memref<34x128xf32, #tpu.memory_space<vmem>>, vector<1x128xf32>,
    %c0_6 = arith.constant 0 : index
    %c0_7 = arith.constant 0 : index
    %6 = tpu.strided_load %arg11[%c0_6, %c0_7] {strides = array<i32: 2, 1>} : memref<34x128xf32, #tpu.memory_space<vmem>>, vector<16x128xf32>
    %c1_8 = arith.constant 1 : index
    %c0_9 = arith.constant 0 : index
    %7 = tpu.strided_load %arg11[%c1_8, %c0_9] {strides = array<i32: 2, 1>} : memref<34x128xf32, #tpu.memory_space<vmem>>, vector<16x128xf32>
    %c2 = arith.constant 2 : index
    %c0_10 = arith.constant 0 : index
    %8 = tpu.strided_load %arg11[%c2, %c0_10] {strides = array<i32: 2, 1>} : memref<34x128xf32, #tpu.memory_space<vmem>>, vector<16x128xf32>
    %c3 = arith.constant 3 : index
    %c0_11 = arith.constant 0 : index
    %9 = tpu.strided_load %arg11[%c3, %c0_11] {strides = array<i32: 2, 1>} : memref<34x128xf32, #tpu.memory_space<vmem>>, vector<16x128xf32>
    %10 = tpu.concatenate %6, %7, %8, %9 in 1 : vector<16x128xf32>, vector<16x128xf32>, vector<16x128xf32>, vector<16x128xf32> -> vector<16x512xf32>
    %11 = arith.truncf %10 : vector<16x512xf32> to vector<16x512xbf16>
    %c0_12 = arith.constant 0 : index
    %c0_13 = arith.constant 0 : index
    %12 = vector.load %arg2[%c0_12, %c0_13] : memref<512x128xbf16, #tpu.memory_space<vmem>>, vector<512x128xbf16>
    %cst_14 = arith.constant dense<0.000000e+00> : vector<16x128xf32>
    %13 = tpu.matmul %11, %12, %cst_14 {dimension_numbers = #tpu.dot_dimension_numbers<[1], [0], [0], [1], [0, 0, 1, 1], [], []>} : vector<16x512xbf16>, vector<512x128xbf16>, vector<16x128xf32> -> vector<16x128xf32>
    %c0_15 = arith.constant 0 : index
    %c0_16 = arith.constant 0 : index
    %14 = vector.load %arg3[%c0_15, %c0_16] : memref<1x128xf32, #tpu.memory_space<vmem>>, vector<1x128xf32>
    %15 = vector.broadcast %14 : vector<1x128xf32> to vector<16x128xf32>
    %16 = arith.addf %13, %15 : vector<16x128xf32>
    %cst_17 = arith.constant 0.000000e+00 : f32
    %17 = vector.broadcast %cst_17 : f32 to vector<16x128xf32>
    %18 = arith.cmpf oge, %16, %17 : vector<16x128xf32>
    %cst_18 = arith.constant 2.000000e-01 : f32
    %19 = vector.broadcast %cst_18 : f32 to vector<16x128xf32>
    %20 = arith.mulf %19, %16 : vector<16x128xf32>
    %21 = arith.select %18, %16, %20 : vector<16x128xi1>, vector<16x128xf32>
    %cst_19 = arith.constant 0.000000e+00 : f32
    %22 = vector.broadcast %cst_19 : f32 to vector<1x128xf32>
    %c0_20 = arith.constant 0 : index
    %c0_21 = arith.constant 0 : index
    %23 = vector.load %arg12[%c0_20, %c0_21] : memref<18x128xf32, #tpu.memory_space<vmem>>, vector<1x128xf32>
    tpu.vector_store %arg12[%c0_20, %c0_21], %22 {strides = array<i32>} : memref<18x128xf32, #tpu.memory_space<vmem>>, vector<1x128xf32>,
    %c1_22 = arith.constant 1 : index
    %c0_23 = arith.constant 0 : index
    %24 = vector.load %arg12[%c1_22, %c0_23] : memref<18x128xf32, #tpu.memory_space<vmem>>, vector<16x128xf32>
    tpu.vector_store %arg12[%c1_22, %c0_23], %21 {strides = array<i32>} : memref<18x128xf32, #tpu.memory_space<vmem>>, vector<16x128xf32>,
    %c17 = arith.constant 17 : index
    %c0_24 = arith.constant 0 : index
    %25 = vector.load %arg12[%c17, %c0_24] : memref<18x128xf32, #tpu.memory_space<vmem>>, vector<1x128xf32>
    tpu.vector_store %arg12[%c17, %c0_24], %22 {strides = array<i32>} : memref<18x128xf32, #tpu.memory_space<vmem>>, vector<1x128xf32>,
    %c0_25 = arith.constant 0 : index
    %c0_26 = arith.constant 0 : index
    %26 = tpu.strided_load %arg12[%c0_25, %c0_26] {strides = array<i32: 2, 1>} : memref<18x128xf32, #tpu.memory_space<vmem>>, vector<8x128xf32>
    %c1_27 = arith.constant 1 : index
    %c0_28 = arith.constant 0 : index
    %27 = tpu.strided_load %arg12[%c1_27, %c0_28] {strides = array<i32: 2, 1>} : memref<18x128xf32, #tpu.memory_space<vmem>>, vector<8x128xf32>
    %c2_29 = arith.constant 2 : index
    %c0_30 = arith.constant 0 : index
    %28 = tpu.strided_load %arg12[%c2_29, %c0_30] {strides = array<i32: 2, 1>} : memref<18x128xf32, #tpu.memory_space<vmem>>, vector<8x128xf32>
    %c3_31 = arith.constant 3 : index
    %c0_32 = arith.constant 0 : index
    %29 = tpu.strided_load %arg12[%c3_31, %c0_32] {strides = array<i32: 2, 1>} : memref<18x128xf32, #tpu.memory_space<vmem>>, vector<8x128xf32>
    %30 = tpu.concatenate %26, %27, %28, %29 in 1 : vector<8x128xf32>, vector<8x128xf32>, vector<8x128xf32>, vector<8x128xf32> -> vector<8x512xf32>
    %31 = arith.truncf %30 : vector<8x512xf32> to vector<8x512xbf16>
    %c0_33 = arith.constant 0 : index
    %c0_34 = arith.constant 0 : index
    %32 = vector.load %arg4[%c0_33, %c0_34] : memref<512x128xbf16, #tpu.memory_space<vmem>>, vector<512x128xbf16>
    %cst_35 = arith.constant dense<0.000000e+00> : vector<8x128xf32>
    %33 = tpu.matmul %31, %32, %cst_35 {dimension_numbers = #tpu.dot_dimension_numbers<[1], [0], [0], [1], [0, 0, 1, 1], [], []>} : vector<8x512xbf16>, vector<512x128xbf16>, vector<8x128xf32> -> vector<8x128xf32>
    %c0_36 = arith.constant 0 : index
    %c0_37 = arith.constant 0 : index
    %34 = vector.load %arg5[%c0_36, %c0_37] : memref<1x128xf32, #tpu.memory_space<vmem>>, vector<1x128xf32>
    %35 = vector.broadcast %34 : vector<1x128xf32> to vector<8x128xf32>
    %36 = arith.addf %33, %35 : vector<8x128xf32>
    %cst_38 = arith.constant 0.000000e+00 : f32
    %37 = vector.broadcast %cst_38 : f32 to vector<8x128xf32>
    %38 = arith.cmpf oge, %36, %37 : vector<8x128xf32>
    %cst_39 = arith.constant 2.000000e-01 : f32
    %39 = vector.broadcast %cst_39 : f32 to vector<8x128xf32>
    %40 = arith.mulf %39, %36 : vector<8x128xf32>
    %41 = arith.select %38, %36, %40 : vector<8x128xi1>, vector<8x128xf32>
    %cst_40 = arith.constant 0.000000e+00 : f32
    %42 = vector.broadcast %cst_40 : f32 to vector<1x128xf32>
    %c0_41 = arith.constant 0 : index
    %c0_42 = arith.constant 0 : index
    %43 = vector.load %arg13[%c0_41, %c0_42] : memref<10x128xf32, #tpu.memory_space<vmem>>, vector<1x128xf32>
    tpu.vector_store %arg13[%c0_41, %c0_42], %42 {strides = array<i32>} : memref<10x128xf32, #tpu.memory_space<vmem>>, vector<1x128xf32>,
    %c1_43 = arith.constant 1 : index
    %c0_44 = arith.constant 0 : index
    %44 = vector.load %arg13[%c1_43, %c0_44] : memref<10x128xf32, #tpu.memory_space<vmem>>, vector<8x128xf32>
    tpu.vector_store %arg13[%c1_43, %c0_44], %41 {strides = array<i32>} : memref<10x128xf32, #tpu.memory_space<vmem>>, vector<8x128xf32>,
    %c9 = arith.constant 9 : index
    %c0_45 = arith.constant 0 : index
    %45 = vector.load %arg13[%c9, %c0_45] : memref<10x128xf32, #tpu.memory_space<vmem>>, vector<1x128xf32>
    tpu.vector_store %arg13[%c9, %c0_45], %42 {strides = array<i32>} : memref<10x128xf32, #tpu.memory_space<vmem>>, vector<1x128xf32>,
    %c0_46 = arith.constant 0 : index
    %c0_47 = arith.constant 0 : index
    %46 = tpu.strided_load %arg13[%c0_46, %c0_47] {strides = array<i32: 2, 1>} : memref<10x128xf32, #tpu.memory_space<vmem>>, vector<4x128xf32>
    %c1_48 = arith.constant 1 : index
    %c0_49 = arith.constant 0 : index
    %47 = tpu.strided_load %arg13[%c1_48, %c0_49] {strides = array<i32: 2, 1>} : memref<10x128xf32, #tpu.memory_space<vmem>>, vector<4x128xf32>
    %c2_50 = arith.constant 2 : index
    %c0_51 = arith.constant 0 : index
    %48 = tpu.strided_load %arg13[%c2_50, %c0_51] {strides = array<i32: 2, 1>} : memref<10x128xf32, #tpu.memory_space<vmem>>, vector<4x128xf32>
    %c3_52 = arith.constant 3 : index
    %c0_53 = arith.constant 0 : index
    %49 = tpu.strided_load %arg13[%c3_52, %c0_53] {strides = array<i32: 2, 1>} : memref<10x128xf32, #tpu.memory_space<vmem>>, vector<4x128xf32>
    %50 = tpu.concatenate %46, %47, %48, %49 in 1 : vector<4x128xf32>, vector<4x128xf32>, vector<4x128xf32>, vector<4x128xf32> -> vector<4x512xf32>
    %51 = arith.truncf %50 : vector<4x512xf32> to vector<4x512xbf16>
    %c0_54 = arith.constant 0 : index
    %c0_55 = arith.constant 0 : index
    %52 = vector.load %arg6[%c0_54, %c0_55] : memref<512x128xbf16, #tpu.memory_space<vmem>>, vector<512x128xbf16>
    %cst_56 = arith.constant dense<0.000000e+00> : vector<4x128xf32>
    %53 = tpu.matmul %51, %52, %cst_56 {dimension_numbers = #tpu.dot_dimension_numbers<[1], [0], [0], [1], [0, 0, 1, 1], [], []>} : vector<4x512xbf16>, vector<512x128xbf16>, vector<4x128xf32> -> vector<4x128xf32>
    %c0_57 = arith.constant 0 : index
    %c0_58 = arith.constant 0 : index
    %54 = vector.load %arg7[%c0_57, %c0_58] : memref<1x128xf32, #tpu.memory_space<vmem>>, vector<1x128xf32>
    %55 = vector.broadcast %54 : vector<1x128xf32> to vector<4x128xf32>
    %56 = arith.addf %53, %55 : vector<4x128xf32>
    %cst_59 = arith.constant 0.000000e+00 : f32
    %57 = vector.broadcast %cst_59 : f32 to vector<4x128xf32>
    %58 = arith.cmpf oge, %56, %57 : vector<4x128xf32>
    %cst_60 = arith.constant 2.000000e-01 : f32
    %59 = vector.broadcast %cst_60 : f32 to vector<4x128xf32>
    %60 = arith.mulf %59, %56 : vector<4x128xf32>
    %61 = arith.select %58, %56, %60 : vector<4x128xi1>, vector<4x128xf32>
    %c0_61 = arith.constant 0 : index
    %c0_62 = arith.constant 0 : index
    %62 = vector.load %arg8[%c0_61, %c0_62] : memref<4x128xf32, #tpu.memory_space<vmem>>, vector<4x128xf32>
    %63 = arith.mulf %61, %62 : vector<4x128xf32>
    %cst_63 = arith.constant dense<0.000000e+00> : vector<4xf32>
    %64 = vector.multi_reduction <add>, %63, %cst_63 [1] : vector<4x128xf32> to vector<4xf32>
    %65 = vector.shape_cast %64 : vector<4xf32> to vector<4x1xf32>
    %cst_64 = arith.constant dense<0.000000e+00> : vector<1xf32>
    %66 = vector.multi_reduction <add>, %65, %cst_64 [0] : vector<4x1xf32> to vector<1xf32>
    %67 = vector.shape_cast %66 : vector<1xf32> to vector<1x1xf32>
    %c0_65 = arith.constant 0 : index
    %c0_66 = arith.constant 0 : index
    %68 = memref.load %arg9[%c0_65, %c0_66] : memref<1x1xf32, #tpu.memory_space<smem>>
    %69 = vector.broadcast %68 : f32 to vector<1x1xf32>
    %70 = arith.addf %67, %69 : vector<1x1xf32>
    %c0_67 = arith.constant 0 : index
    %c0_68 = arith.constant 0 : index
    %c0_69 = arith.constant 0 : index
    %71 = vector.load %arg10[%c0_67, %c0_68, %c0_69] : memref<1x1x1xf32, #tpu.memory_space<vmem>>, vector<1x1x1xf32>
    %72 = vector.shape_cast %71 : vector<1x1x1xf32> to vector<1x1xf32>
    %73 = vector.shape_cast %70 : vector<1x1xf32> to vector<1x1x1xf32>
    tpu.vector_store %arg10[%c0_67, %c0_68, %c0_69], %73 {strides = array<i32>} : memref<1x1x1xf32, #tpu.memory_space<vmem>>, vector<1x1x1xf32>,
    return
  }
  func.func @transform_0(%arg0: i32) -> (i32, i32, i32) {
    %c0_i32 = arith.constant 0 : i32
    %c0_i32_0 = arith.constant 0 : i32
    %c0_i32_1 = arith.constant 0 : i32
    return %arg0, %c0_i32, %c0_i32_0 : i32, i32, i32
  }
  func.func @transform_1(%arg0: i32) -> (i32, i32) {
    %c0_i32 = arith.constant 0 : i32
    %c0_i32_0 = arith.constant 0 : i32
    %c0_i32_1 = arith.constant 0 : i32
    return %c0_i32, %c0_i32_0 : i32, i32
  }
  func.func @transform_2(%arg0: i32) -> (i32, i32) {
    %c0_i32 = arith.constant 0 : i32
    %c0_i32_0 = arith.constant 0 : i32
    %c0_i32_1 = arith.constant 0 : i32
    return %c0_i32, %c0_i32_0 : i32, i32
  }
  func.func @transform_3(%arg0: i32) -> (i32, i32) {
    %c0_i32 = arith.constant 0 : i32
    %c0_i32_0 = arith.constant 0 : i32
    %c0_i32_1 = arith.constant 0 : i32
    return %c0_i32, %c0_i32_0 : i32, i32
  }
  func.func @transform_4(%arg0: i32) -> (i32, i32) {
    %c0_i32 = arith.constant 0 : i32
    %c0_i32_0 = arith.constant 0 : i32
    %c0_i32_1 = arith.constant 0 : i32
    return %c0_i32, %c0_i32_0 : i32, i32
  }
  func.func @transform_5(%arg0: i32) -> (i32, i32) {
    %c0_i32 = arith.constant 0 : i32
    %c0_i32_0 = arith.constant 0 : i32
    %c0_i32_1 = arith.constant 0 : i32
    return %c0_i32, %c0_i32_0 : i32, i32
  }
  func.func @transform_6(%arg0: i32) -> (i32, i32) {
    %c0_i32 = arith.constant 0 : i32
    %c0_i32_0 = arith.constant 0 : i32
    %c0_i32_1 = arith.constant 0 : i32
    return %c0_i32, %c0_i32_0 : i32, i32
  }
  func.func @transform_7(%arg0: i32) -> (i32, i32) {
    %c0_i32 = arith.constant 0 : i32
    %c0_i32_0 = arith.constant 0 : i32
    %c0_i32_1 = arith.constant 0 : i32
    return %c0_i32, %c0_i32_0 : i32, i32
  }
  func.func @transform_8(%arg0: i32) -> (i32, i32) {
    %c0_i32 = arith.constant 0 : i32
    %c0_i32_0 = arith.constant 0 : i32
    %c0_i32_1 = arith.constant 0 : i32
    return %c0_i32, %c0_i32_0 : i32, i32
  }
  func.func @transform_9(%arg0: i32) -> (i32, i32, i32) {
    %c0_i32 = arith.constant 0 : i32
    %c0_i32_0 = arith.constant 0 : i32
    %c0_i32_1 = arith.constant 0 : i32
    return %arg0, %c0_i32, %c0_i32_0 : i32, i32, i32
  }
}

</mosaic_0001>

<bundles_post_ra>
// kernel: critic_forward.1
= control target key start
LH: loop header
LB: loop body
LE: loop exit
PB: predicated region body
PF: predicated region fallthrough
CT: control target
= control target key end

     0   :  { %s1905_s11 = smov 0   ;;  %s2230_s0 = inlined_call_operand.vmem [shape: f32[2,32,128], index: 0, kind: input, shape index: {}]   ;;  %s2231_s1 = inlined_call_operand.vmem [shape: bf16[512,128], index: 1, kind: input, shape index: {}]   ;;  %s2232_s2 = inlined_call_operand.vmem [shape: f32[1,128], index: 2, kind: input, shape index: {}]   ;;  %s2233_s3 = inlined_call_operand.vmem [shape: bf16[512,128], index: 3, kind: input, shape index: {}]   ;;  %s2234_s4 = inlined_call_operand.vmem [shape: f32[1,128], index: 4, kind: input, shape index: {}]   ;;  %s2235_s5 = inlined_call_operand.vmem [shape: bf16[512,128], index: 5, kind: input, shape index: {}]   ;;  %s2236_s6 = inlined_call_operand.vmem [shape: f32[1,128], index: 6, kind: input, shape index: {}]   ;;  %s2237_s7 = inlined_call_operand.vmem [shape: f32[4,128], index: 7, kind: input, shape index: {}]   ;;  %s2238_s8 = inlined_call_operand.<no memory space> [shape: f32[1,1], index: 8, kind: input, shape index: {}]   ;;  %s2239_s9 = inlined_call_operand.vmem [shape: f32[2,1,1], index: 9, kind: output, shape index: {}]  }
   0x1   :  { %14 = sst [smem:[#allocation5]] %s2238_s8 }
   0x2 LB: > { %s1497_s12 = sadd.s32 4294967295, %s1849_s11   ;;  %p1501_p0 = scmp.ge.s32.totalorder %s1849_s11, 1  ;;  %s1849_s11 = sphi %s1905_s11, %s20_s11  }
   0x3   : > { %p288_p1 = scmp.lt.s32.totalorder %s1849_s11, 3 }
   0x5   : > { %p289_p2 = pnand %p1501_p0, %p288_p1 }
   0x6   : > { %v1747_v0 = vld [vmem:[%s2231_s1 + $0x40] sm:$0xff] (!%p289_p2)   ;;  %v1851_v3 = vmov (!%p289_p2), 0.0   ;;  %v1751_v5 = vld [vmem:[%s2231_s1 + $0x48] sm:$0xff] (!%p289_p2)   ;;  %v1755_v9 = vld [vmem:[%s2231_s1 + $0x50] sm:$0xff] (!%p289_p2)   ;;  %p322_p3 = scmp.lt.s32.totalorder (!%p289_p2), %s1497_s12, 1  ;;  %vm1434_vm4 = vcmask (!%p289_p2), 1043456  }
   0x7   : > { %292 = sbr.rel (%p289_p2) target bundleno = 891 (0x37b), region = 56  ;;  %v1748_v1 = vld [vmem:[%s2231_s1 + $0xc0] sm:$0xff] (!%p289_p2)   ;;  %1606 = vmatprep.subr.bf16.mxu0 (!%p289_p2), %v1747_v0  ;;  %340 = vst [vmem:[#allocation2 + $0x21] sm:$0x1] (!%p289_p2), %v1851_v3  ;;  %335 = vst [vmem:[#allocation2] sm:$0x1] (!%p289_p2), %v1851_v3 }
   0x8   : > { %v1749_v2 = vld [vmem:[%s2231_s1] sm:$0xff] (!%p289_p2)   ;;  %711 = vst [vmem:[#allocation3] sm:$0x1] (!%p289_p2), %v1851_v3  ;;  %714 = vst [vmem:[#allocation3 + $0x11] sm:$0x1] (!%p289_p2), %v1851_v3  ;;  %1628 = vmatprep.subr.bf16.mxu1 (!%p289_p2), %v1748_v1  ;;  %v1752_v6 = vld [vmem:[%s2231_s1 + $0xc8] sm:$0xff] (!%p289_p2)  }
   0x9   : > { %1072 = vst [vmem:[#allocation4] sm:$0x1] (!%p289_p2), %v1851_v3  ;;  %1074 = vst [vmem:[#allocation4 + $0x9] sm:$0x1] (!%p289_p2), %v1851_v3  ;;  %v1750_v4 = vld [vmem:[%s2231_s1 + $0x80] sm:$0xff] (!%p289_p2)   ;;  %1607 = vmatpush3.bf16.msra.mxu0 (!%p289_p2), %v1749_v2  ;;  %v1753_v7 = vld [vmem:[%s2231_s1 + $0x8] sm:$0xff] (!%p289_p2)  }
   0xa   : > { %1629 = vmatpush3.bf16.msra.mxu1 (!%p289_p2), %v1750_v4  ;;  %1608 = vmatprep.subr.bf16.mxu0 (!%p289_p2), %v1751_v5  ;;  %v1754_v8 = vld [vmem:[%s2231_s1 + $0x88] sm:$0xff] (!%p289_p2)   ;;  %v1756_v10 = vld [vmem:[%s2231_s1 + $0xd0] sm:$0xff] (!%p289_p2)   ;;  %v1759_v13 = vld [vmem:[%s2231_s1 + $0x58] sm:$0xff] (!%p289_p2)   ;;  %s1445_s16 = sld [smem:[#allocation5]] (!%p289_p2)  ;;  %vm1448_vm5 = vcmask (!%p289_p2), 0  }
   0xb   : > { %1630 = vmatprep.subr.bf16.mxu1 (!%p289_p2), %v1752_v6  ;;  %v1757_v11 = vld [vmem:[%s2231_s1 + $0x10] sm:$0xff] (!%p289_p2)   ;;  %v1760_v14 = vld [vmem:[%s2231_s1 + $0xd8] sm:$0xff] (!%p289_p2)   ;;  %v1763_v17 = vld [vmem:[%s2231_s1 + $0x60] sm:$0xff] (!%p289_p2)  }
   0xc   : > { %v1758_v12 = vld [vmem:[%s2231_s1 + $0x90] sm:$0xff] (!%p289_p2)   ;;  %v1761_v15 = vld [vmem:[%s2231_s1 + $0x18] sm:$0xff] (!%p289_p2)   ;;  %v1764_v18 = vld [vmem:[%s2231_s1 + $0xe0] sm:$0xff] (!%p289_p2)  }
   0xd   : > { %1609 = vmatpush3.bf16.msra.mxu0 (!%p289_p2), %v1753_v7  ;;  %v1762_v16 = vld [vmem:[%s2231_s1 + $0x98] sm:$0xff] (!%p289_p2)   ;;  %v1765_v19 = vld [vmem:[%s2231_s1 + $0x20] sm:$0xff] (!%p289_p2)   ;;  %v1767_v21 = vld [vmem:[%s2231_s1 + $0x68] sm:$0xff] (!%p289_p2)  }
   0xe   : > { %1631 = vmatpush3.bf16.msra.mxu1 %v1754_v8  ;;  %1610 = vmatprep.subr.bf16.mxu0 %v1755_v9  ;;  %v1766_v20 = vld [vmem:[%s2231_s1 + $0xa0] sm:$0xff]   ;;  %v1768_v22 = vld [vmem:[%s2231_s1 + $0xe8] sm:$0xff]   ;;  %s2241_s12 = smov (!%p322_p3, %s1497_s12), 1  ;;  %v1771_v25 = vld [vmem:[%s2231_s1 + $0x70] sm:$0xff]  }
   0xf   : > { %1632 = vmatprep.subr.bf16.mxu1 %v1756_v10  ;;  %v1769_v23 = vld [vmem:[%s2231_s1 + $0x28] sm:$0xff]   ;;  %v1772_v26 = vld [vmem:[%s2231_s1 + $0xf0] sm:$0xff]   ;;  %s1605_s26 = sshll.u32 %s2241_s12, 5  ;;  %v1775_v29 = vld [vmem:[%s2231_s1 + $0x78] sm:$0xff]   ;;  %s329_s19 = scalar_lea.vmem %s2239_s9, %s2241_s12 }
  0x10   : > { %v1770_v24 = vld [vmem:[%s2231_s1 + $0xa8] sm:$0xff]   ;;  %v1773_v27 = vld [vmem:[%s2231_s1 + $0x30] sm:$0xff]   ;;  %v1776_v30 = vld [vmem:[%s2231_s1 + $0xf8] sm:$0xff]   ;;  %s326_s15 = scalar_lea.vmem %s2230_s0, %s1605_s26 }
  0x11   : > { %1611 = vmatpush3.bf16.msra.mxu0 %v1757_v11  ;;  %v1774_v28 = vld [vmem:[%s2231_s1 + $0xb0] sm:$0xff]   ;;  %v1777_v31 = vld [vmem:[%s2231_s1 + $0x38] sm:$0xff]   ;;  %v331_v33 = vld [vmem:[%s326_s15] sm:$0xff] }
  0x12   : > { %1633 = vmatpush3.bf16.msra.mxu1 %v1758_v12  ;;  %1612 = vmatprep.subr.bf16.mxu0 %v1759_v13  ;;  %v1778_v32 = vld [vmem:[%s2231_s1 + $0xb8] sm:$0xff]   ;;  %v332_v34 = vld [vmem:[%s326_s15 + $0x8] sm:$0xff]  ;;  %v333_v35 = vld [vmem:[%s326_s15 + $0x10] sm:$0xff]  ;;  %336 = vst [vmem:[#allocation2 + $0x1] sm:$0xff] %v331_v33 }
  0x13   : > { %1634 = vmatprep.subr.bf16.mxu1 %v1760_v14  ;;  %v334_v36 = vld [vmem:[%s326_s15 + $0x18] sm:$0xff]  ;;  %337 = vst [vmem:[#allocation2 + $0x9] sm:$0xff] %v332_v34  ;;  %338 = vst [vmem:[#allocation2 + $0x11] sm:$0xff] %v333_v35  ;;  %v1779_v37 = vld [vmem:[%s2233_s3 + $0x40] sm:$0xff]  }
  0x14   : > { %339 = vst [vmem:[#allocation2 + $0x19] sm:$0xff] %v334_v36  ;;  %v1780_v38 = vld [vmem:[%s2233_s3 + $0xc0] sm:$0xff]   ;;  %v1783_v52 = vld [vmem:[%s2233_s3 + $0x48] sm:$0xff]   ;;  %v1787_v57 = vld [vmem:[%s2233_s3 + $0x50] sm:$0xff]  }
  0x15   : > { %1613 = vmatpush3.bf16.msra.mxu0 %v1761_v15  ;;  %v1781_v42 = vld [vmem:[%s2233_s3] sm:$0xff]   ;;  %v1784_v54 = vld [vmem:[%s2233_s3 + $0xc8] sm:$0xff]   ;;  %v1788_v58 = vld [vmem:[%s2233_s3 + $0xd0] sm:$0xff]  }
  0x16   : > { %1635 = vmatpush3.bf16.msra.mxu1 %v1762_v16  ;;  %1614 = vmatprep.subr.bf16.mxu0 %v1763_v17  ;;  %v1782_v43 = vld [vmem:[%s2233_s3 + $0x80] sm:$0xff]   ;;  %v1785_v55 = vld [vmem:[%s2233_s3 + $0x8] sm:$0xff]   ;;  %v1789_v59 = vld [vmem:[%s2233_s3 + $0x10] sm:$0xff]  }
  0x17   : > { %1636 = vmatprep.subr.bf16.mxu1 %v1764_v18  ;;  %v1786_v56 = vld [vmem:[%s2233_s3 + $0x88] sm:$0xff]   ;;  %v1790_v60 = vld [vmem:[%s2233_s3 + $0x90] sm:$0xff]   ;;  %v1791_v61 = vld [vmem:[%s2233_s3 + $0x58] sm:$0xff]  }
  0x18   : > { %v1792_v62 = vld [vmem:[%s2233_s3 + $0xd8] sm:$0xff]   ;;  %v1795_v1 = vld [vmem:[%s2233_s3 + $0x60] sm:$0xff]   ;;  %v1799_v5 = vld [vmem:[%s2233_s3 + $0x68] sm:$0xff]  }
  0x19   : > { %1615 = vmatpush3.bf16.msra.mxu0 %v1765_v19  ;;  %v1793_v63 = vld [vmem:[%s2233_s3 + $0x18] sm:$0xff]   ;;  %v1796_v2 = vld [vmem:[%s2233_s3 + $0xe0] sm:$0xff]   ;;  %v1800_v6 = vld [vmem:[%s2233_s3 + $0xe8] sm:$0xff]  }
  0x1a   : > { %1637 = vmatpush3.bf16.msra.mxu1 %v1766_v20  ;;  %1616 = vmatprep.subr.bf16.mxu0 %v1767_v21  ;;  %v345_v39 = vld [vmem:[#allocation2 + $0x1] ss:$2 sm:$0xff]  ;;  %v341_v41 = vld [vmem:[#allocation2] ss:$2 sm:$0xff]  ;;  %v1794_v0 = vld [vmem:[%s2233_s3 + $0x98] sm:$0xff]  }
  0x1b   : > { %1638 = vmatprep.subr.bf16.mxu1 %v1768_v22  ;;  %v353_v40 = vld [vmem:[#allocation2 + $0x3] ss:$2 sm:$0xff]  ;;  %v355_v45 = vld [vmem:[#allocation2 + $0x13] ss:$2 sm:$0xff]  ;;  %v343_v46 = vld [vmem:[#allocation2 + $0x10] ss:$2 sm:$0xff] }
  0x1c   : > { %v347_v44 = vld [vmem:[#allocation2 + $0x11] ss:$2 sm:$0xff]  ;;  %v359_v48 = vpack.c.bf16 %v355_v45, %v353_v40  ;;  %v356_v49 = vpack.c.bf16 %v343_v46, %v341_v41  ;;  %v349_v50 = vld [vmem:[#allocation2 + $0x2] ss:$2 sm:$0xff]  ;;  %v351_v51 = vld [vmem:[#allocation2 + $0x12] ss:$2 sm:$0xff] }
  0x1d   : > { %1617 = vmatpush3.bf16.msra.mxu0 %v1769_v23  ;;  %v357_v47 = vpack.c.bf16 %v347_v44, %v345_v39  ;;  %v358_v53 = vpack.c.bf16 %v351_v51, %v349_v50  ;;  %v1797_v3 = vld [vmem:[%s2233_s3 + $0x20] sm:$0xff]   ;;  %v1801_v7 = vld [vmem:[%s2233_s3 + $0x28] sm:$0xff]   ;;  %v1803_v9 = vld [vmem:[%s2233_s3 + $0x70] sm:$0xff]  }
  0x1e   : > { %1639 = vmatpush3.bf16.msra.mxu1 %v1770_v24  ;;  %1618 = vmatprep.subr.bf16.mxu0 %v1771_v25  ;;  %v1798_v4 = vld [vmem:[%s2233_s3 + $0xa0] sm:$0xff]   ;;  %v1802_v8 = vld [vmem:[%s2233_s3 + $0xa8] sm:$0xff]   ;;  %v1804_v10 = vld [vmem:[%s2233_s3 + $0xf0] sm:$0xff]  }
  0x1f   : > { %1640 = vmatprep.subr.bf16.mxu1 %v1772_v26  ;;  %655 = vmatprep.mubr.bf16.mxu0 %v357_v47  ;;  %v1805_v11 = vld [vmem:[%s2233_s3 + $0x30] sm:$0xff]   ;;  %v1807_v13 = vld [vmem:[%s2233_s3 + $0x78] sm:$0xff]   ;;  %v1811_v17 = vld [vmem:[%s2235_s5 + $0x40] sm:$0xff]  }
  0x20   : > { %696 = vmatprep.mubr.bf16.mxu1 %v359_v48  ;;  %v1806_v12 = vld [vmem:[%s2233_s3 + $0xb0] sm:$0xff]   ;;  %v1808_v14 = vld [vmem:[%s2233_s3 + $0xf8] sm:$0xff]   ;;  %v1812_v18 = vld [vmem:[%s2235_s5 + $0xc0] sm:$0xff]  }
  0x21   : > { %1619 = vmatpush3.bf16.msra.mxu0 %v1773_v27  ;;  %v1809_v15 = vld [vmem:[%s2233_s3 + $0x38] sm:$0xff]   ;;  %v1504_v21 = vld [vmem:[%s2232_s2] ss:$0 sm:$0xff]  ;;  %v1815_v50 = vld [vmem:[%s2235_s5 + $0x48] sm:$0xff]  }
  0x22   : > { %1641 = vmatpush3.bf16.msra.mxu1 %v1774_v28  ;;  %1620 = vmatprep.subr.bf16.mxu0 %v1775_v29  ;;  %v1810_v16 = vld [vmem:[%s2233_s3 + $0xb8] sm:$0xff]   ;;  %v1813_v47 = vld [vmem:[%s2235_s5] sm:$0xff]   ;;  %v1816_v51 = vld [vmem:[%s2235_s5 + $0xc8] sm:$0xff]  }
  0x23   : > { %1642 = vmatprep.subr.bf16.mxu1 %v1776_v30  ;;  %v1814_v48 = vld [vmem:[%s2235_s5 + $0x80] sm:$0xff]  }
  0x25   : > { %1621 = vmatpush3.bf16.msra.mxu0 %v1777_v31 }
  0x26   : > { %1643 = vmatpush3.bf16.msra.mxu1 %v1778_v32  ;;  %1650 = vmatprep.subr.bf16.mxu0 %v1779_v37 }
  0x27   : > { %1672 = vmatprep.subr.bf16.mxu1 %v1780_v38 }
  0x28   : > { %656 = vmatmul.mubr.bf16.vlgmr.msra.gmra.mrb[0].mxu0 %v356_v49 }
  0x29   : > { %697 = vmatmul.mubr.bf16.vlgmr.msra.gmra.mrb[0].mxu1 %v358_v53  ;;  %1651 = vmatpush3.bf16.msra.mxu0 %v1781_v42  ;;  %v1818_v53 = vld [vmem:[%s2235_s5 + $0x88] sm:$0xff]  }
  0x2a   : > { %1673 = vmatpush3.bf16.msra.mxu1 %v1782_v43  ;;  %1652 = vmatprep.subr.bf16.mxu0 %v1783_v52  ;;  %v1817_v52 = vld [vmem:[%s2235_s5 + $0x8] sm:$0xff]  }
  0x2b   : > { %1674 = vmatprep.subr.bf16.mxu1 %v1784_v54  ;;  %v1819_v54 = vld [vmem:[%s2235_s5 + $0x50] sm:$0xff]  }
  0x2d   : > { %1653 = vmatpush3.bf16.msra.mxu0 %v1785_v55  ;;  %v1820_v55 = vld [vmem:[%s2235_s5 + $0xd0] sm:$0xff]  }
  0x2e   : > { %1675 = vmatpush3.bf16.msra.mxu1 %v1786_v56  ;;  %1654 = vmatprep.subr.bf16.mxu0 %v1787_v57  ;;  %v1821_v56 = vld [vmem:[%s2235_s5 + $0x10] sm:$0xff]  }
  0x2f   : > { %1676 = vmatprep.subr.bf16.mxu1 %v1788_v58  ;;  %v1822_v57 = vld [vmem:[%s2235_s5 + $0x90] sm:$0xff]   ;;  %v1823_v58 = vld [vmem:[%s2235_s5 + $0x58] sm:$0xff]  }
  0x31   : > { %1655 = vmatpush3.bf16.msra.mxu0 %v1789_v59  ;;  %v1824_v59 = vld [vmem:[%s2235_s5 + $0xd8] sm:$0xff]  }
  0x32   : > { %1677 = vmatpush3.bf16.msra.mxu1 %v1790_v60  ;;  %1656 = vmatprep.subr.bf16.mxu0 %v1791_v61  ;;  %v1825_v60 = vld [vmem:[%s2235_s5 + $0x18] sm:$0xff]  }
  0x33   : > { %1678 = vmatprep.subr.bf16.mxu1 %v1792_v62  ;;  %v1826_v61 = vld [vmem:[%s2235_s5 + $0x98] sm:$0xff]   ;;  %v1827_v62 = vld [vmem:[%s2235_s5 + $0x60] sm:$0xff]  }
  0x35   : > { %1657 = vmatpush3.bf16.msra.mxu0 %v1793_v63  ;;  %v1828_v63 = vld [vmem:[%s2235_s5 + $0xe0] sm:$0xff]  }
  0x36   : > { %1679 = vmatpush3.bf16.msra.mxu1 %v1794_v0  ;;  %1658 = vmatprep.subr.bf16.mxu0 %v1795_v1  ;;  %v1829_v0 = vld [vmem:[%s2235_s5 + $0x20] sm:$0xff]  }
  0x37   : > { %1680 = vmatprep.subr.bf16.mxu1 %v1796_v2  ;;  %v1830_v1 = vld [vmem:[%s2235_s5 + $0xa0] sm:$0xff]   ;;  %v1831_v2 = vld [vmem:[%s2235_s5 + $0x68] sm:$0xff]  }
  0x39   : > { %1659 = vmatpush3.bf16.msra.mxu0 %v1797_v3  ;;  %v1832_v3 = vld [vmem:[%s2235_s5 + $0xe8] sm:$0xff]  }
  0x3a   : > { %1681 = vmatpush3.bf16.msra.mxu1 %v1798_v4  ;;  %1660 = vmatprep.subr.bf16.mxu0 %v1799_v5  ;;  %v1833_v4 = vld [vmem:[%s2235_s5 + $0x28] sm:$0xff]  }
  0x3b   : > { %1682 = vmatprep.subr.bf16.mxu1 %v1800_v6  ;;  %v1834_v5 = vld [vmem:[%s2235_s5 + $0xa8] sm:$0xff]   ;;  %v1835_v6 = vld [vmem:[%s2235_s5 + $0x70] sm:$0xff]  }
  0x3d   : > { %1661 = vmatpush3.bf16.msra.mxu0 %v1801_v7  ;;  %v1836_v7 = vld [vmem:[%s2235_s5 + $0xf0] sm:$0xff]  }
  0x3e   : > { %1683 = vmatpush3.bf16.msra.mxu1 %v1802_v8  ;;  %1662 = vmatprep.subr.bf16.mxu0 %v1803_v9  ;;  %v1837_v8 = vld [vmem:[%s2235_s5 + $0x30] sm:$0xff]  }
  0x3f   : > { %1684 = vmatprep.subr.bf16.mxu1 %v1804_v10  ;;  %v1838_v9 = vld [vmem:[%s2235_s5 + $0xb0] sm:$0xff]   ;;  %v1839_v10 = vld [vmem:[%s2235_s5 + $0x78] sm:$0xff]  }
  0x41   : > { %1663 = vmatpush3.bf16.msra.mxu0 %v1805_v11  ;;  %v1840_v11 = vld [vmem:[%s2235_s5 + $0xf8] sm:$0xff]  }
  0x42   : > { %1685 = vmatpush3.bf16.msra.mxu1 %v1806_v12  ;;  %1664 = vmatprep.subr.bf16.mxu0 %v1807_v13  ;;  %v1841_v12 = vld [vmem:[%s2235_s5 + $0x38] sm:$0xff]  }
  0x43   : > { %1686 = vmatprep.subr.bf16.mxu1 %v1808_v14  ;;  %v1842_v13 = vld [vmem:[%s2235_s5 + $0xb8] sm:$0xff]  }
  0x45   : > { %1665 = vmatpush3.bf16.msra.mxu0 %v1809_v15 }
  0x46   : > { %1687 = vmatpush3.bf16.msra.mxu1 %v1810_v16  ;;  %1694 = vmatprep.subr.bf16.mxu0 %v1811_v17  ;;  %v1537_v16 = vld [vmem:[%s2234_s4] ss:$0 sm:$0xff] }
  0x47   : > { %1716 = vmatprep.subr.bf16.mxu1 %v1812_v18 }
  0xfb   : > { %v1622_v19 = vpop.f32.mrb[0].mxu0 }
  0xfc   : > { %v1644_v20 = vpop.f32.mrb[0].mxu1  ;;  %v1623_v22 = vpop.f32.mrb[1].mxu0 }
  0xfd   : > { %v1645_v23 = vpop.f32.mrb[1].mxu1  ;;  %v1624_v24 = vadd.f32 %v1623_v22, %v1622_v19  ;;  %v1625_v26 = vpop.f32.mrb[2].mxu0 }
  0xfe   : > { %v1646_v25 = vadd.f32 %v1645_v23, %v1644_v20  ;;  %v1647_v27 = vpop.f32.mrb[2].mxu1  ;;  %v1626_v28 = vpop.f32.mrb[3].mxu0 }
  0xff   : > { %v1648_v29 = vpop.f32.mrb[3].mxu1  ;;  %v658_v30 = vadd.f32 %v1624_v24, %v1504_v21  ;;  %v1627_v31 = vadd.f32 %v1626_v28, %v1625_v26 }
 0x100   : > { %v1649_v32 = vadd.f32 %v1648_v29, %v1647_v27 }
 0x101   : > { %v699_v33 = vadd.f32 %v1646_v25, %v658_v30  ;;  %v661_v34 = vadd.f32 %v1627_v31, %v1504_v21 }
 0x103   : > { %vm705_vm0 = vcmp.ge.f32.partialorder %v699_v33, 0.0  ;;  %v707_v35 = vmul.f32 0.2, %v699_v33  ;;  %v702_v36 = vadd.f32 %v1649_v32, %v661_v34 }
 0x105   : > { %v709_v37 = vsel %vm705_vm0, %v699_v33, %v707_v35  ;;  %vm706_vm1 = vcmp.ge.f32.partialorder %v702_v36, 0.0  ;;  %v708_v38 = vmul.f32 0.2, %v702_v36 }
 0x106   : > { %712 = vst [vmem:[#allocation3 + $0x1] sm:$0xff] %v709_v37 }
 0x107   : > { %v710_v39 = vsel %vm706_vm1, %v702_v36, %v708_v38 }
 0x108   : > { %713 = vst [vmem:[#allocation3 + $0x9] sm:$0xff] %v710_v39  ;;  %v1570_v39 = vld [vmem:[%s2236_s6] ss:$0 sm:$0xff] }
 0x10f   : > { %v717_v40 = vld [vmem:[#allocation3 + $0x1] ss:$2 sm:$0xff]  ;;  %v715_v42 = vld [vmem:[#allocation3] ss:$2 sm:$0xff] }
 0x110   : > { %v721_v41 = vld [vmem:[#allocation3 + $0x3] ss:$2 sm:$0xff]  ;;  %v723_v43 = vpack.c.bf16 %v717_v40, %v717_v40  ;;  %v722_v45 = vpack.c.bf16 %v715_v42, %v715_v42  ;;  %v719_v46 = vld [vmem:[#allocation3 + $0x2] ss:$2 sm:$0xff] }
 0x111   : > { %v725_v44 = vpack.c.bf16 %v721_v41, %v721_v41  ;;  %v724_v49 = vpack.c.bf16 %v719_v46, %v719_v46 }
 0x112   : > { %1021 = vmatprep.mubr.bf16.mxu0 %v723_v43 }
 0x113   : > { %1061 = vmatprep.mubr.bf16.mxu1 %v725_v44  ;;  %1022 = vmatmul.mubr.bf16.vlgmr.msra.gmra.mrb[4].mxu0 %v722_v45 }
 0x114   : > { %1062 = vmatmul.mubr.bf16.vlgmr.msra.gmra.mrb[4].mxu1 %v724_v49  ;;  %1695 = vmatpush3.bf16.msra.mxu0 %v1813_v47 }
 0x115   : > { %1717 = vmatpush3.bf16.msra.mxu1 %v1814_v48  ;;  %1696 = vmatprep.subr.bf16.mxu0 %v1815_v50 }
 0x116   : > { %1718 = vmatprep.subr.bf16.mxu1 %v1816_v51  ;;  %v1432_v51 = vld [vmem:[%s2237_s7] sm:$0xf] }
 0x118   : > { %1697 = vmatpush3.bf16.msra.mxu0 %v1817_v52 }
 0x119   : > { %1719 = vmatpush3.bf16.msra.mxu1 %v1818_v53  ;;  %1698 = vmatprep.subr.bf16.mxu0 %v1819_v54 }
 0x11a   : > { %1720 = vmatprep.subr.bf16.mxu1 %v1820_v55 }
 0x11c   : > { %1699 = vmatpush3.bf16.msra.mxu0 %v1821_v56 }
 0x11d   : > { %1721 = vmatpush3.bf16.msra.mxu1 %v1822_v57  ;;  %1700 = vmatprep.subr.bf16.mxu0 %v1823_v58 }
 0x11e   : > { %1722 = vmatprep.subr.bf16.mxu1 %v1824_v59 }
 0x120   : > { %1701 = vmatpush3.bf16.msra.mxu0 %v1825_v60 }
 0x121   : > { %1723 = vmatpush3.bf16.msra.mxu1 %v1826_v61  ;;  %1702 = vmatprep.subr.bf16.mxu0 %v1827_v62  ;;  %v1446_v62 = vstv %s1445_s16 }
 0x122   : > { %1724 = vmatprep.subr.bf16.mxu1 %v1828_v63 }
 0x124   : > { %1703 = vmatpush3.bf16.msra.mxu0 %v1829_v0 }
 0x125   : > { %1725 = vmatpush3.bf16.msra.mxu1 %v1830_v1  ;;  %1704 = vmatprep.subr.bf16.mxu0 %v1831_v2 }
 0x126   : > { %1726 = vmatprep.subr.bf16.mxu1 %v1832_v3 }
 0x128   : > { %1705 = vmatpush3.bf16.msra.mxu0 %v1833_v4 }
 0x129   : > { %1727 = vmatpush3.bf16.msra.mxu1 %v1834_v5  ;;  %1706 = vmatprep.subr.bf16.mxu0 %v1835_v6 }
 0x12a   : > { %1728 = vmatprep.subr.bf16.mxu1 %v1836_v7 }
 0x12c   : > { %1707 = vmatpush3.bf16.msra.mxu0 %v1837_v8 }
 0x12d   : > { %1729 = vmatpush3.bf16.msra.mxu1 %v1838_v9  ;;  %1708 = vmatprep.subr.bf16.mxu0 %v1839_v10 }
 0x12e   : > { %1730 = vmatprep.subr.bf16.mxu1 %v1840_v11 }
 0x130   : > { %1709 = vmatpush3.bf16.msra.mxu0 %v1841_v12 }
 0x131   : > { %1731 = vmatpush3.bf16.msra.mxu1 %v1842_v13 }
 0x1e6   : > { %v1666_v14 = vpop.f32.mrb[4].mxu0 }
 0x1e7   : > { %v1688_v15 = vpop.f32.mrb[4].mxu1  ;;  %v1667_v17 = vpop.f32.mrb[5].mxu0 }
 0x1e8   : > { %v1689_v18 = vpop.f32.mrb[5].mxu1  ;;  %v1668_v19 = vadd.f32 %v1667_v17, %v1666_v14  ;;  %v1669_v21 = vpop.f32.mrb[6].mxu0 }
 0x1e9   : > { %v1690_v20 = vadd.f32 %v1689_v18, %v1688_v15  ;;  %v1691_v22 = vpop.f32.mrb[6].mxu1  ;;  %v1670_v23 = vpop.f32.mrb[7].mxu0 }
 0x1ea   : > { %v1692_v24 = vpop.f32.mrb[7].mxu1  ;;  %v1024_v25 = vadd.f32 %v1668_v19, %v1537_v16 }
 0x1ec   : > { %v1064_v26 = vadd.f32 %v1690_v20, %v1024_v25 }
 0x1ee   : > { %vm1069_vm2 = vcmp.ge.f32.partialorder %v1064_v26, 0.0  ;;  %v1070_v27 = vmul.f32 0.2, %v1064_v26 }
 0x1f0   : > { %v1071_v28 = vsel %vm1069_vm2, %v1064_v26, %v1070_v27 }
 0x1f1   : > { %1073 = vst [vmem:[#allocation4 + $0x1] sm:$0xff] %v1071_v28 }
 0x1f8   : > { %v1077_v29 = vld [vmem:[#allocation4 + $0x1] ss:$2 sm:$0xf]  ;;  %v1075_v33 = vld [vmem:[#allocation4] ss:$2 sm:$0xf] }
 0x1f9   : > { %v1081_v30 = vld [vmem:[#allocation4 + $0x3] ss:$2 sm:$0xf]  ;;  %v1083_v31 = vpack.c.bf16 %v1077_v29, %v1077_v29  ;;  %v1079_v34 = vld [vmem:[#allocation4 + $0x2] ss:$2 sm:$0xf]  ;;  %v1082_v35 = vpack.c.bf16 %v1075_v33, %v1075_v33 }
 0x1fa   : > { %v1085_v32 = vpack.c.bf16 %v1081_v30, %v1081_v30  ;;  %v1084_v36 = vpack.c.bf16 %v1079_v34, %v1079_v34 }
 0x1fb   : > { %1381 = vmatprep.mubr.bf16.mxu0 %v1083_v31 }
 0x1fc   : > { %1421 = vmatprep.mubr.bf16.mxu1 %v1085_v32  ;;  %1382 = vmatmul.mubr.bf16.vlgmr.msra.gmra.mrb[8].mxu0 %v1082_v35 }
 0x1fd   : > { %1422 = vmatmul.mubr.bf16.vlgmr.msra.gmra.mrb[8].mxu1 %v1084_v36 }
 0x2cf   : > { %v1710_v37 = vpop.f32.mrb[8].mxu0 }
 0x2d0   : > { %v1732_v38 = vpop.f32.mrb[8].mxu1  ;;  %v1711_v40 = vpop.f32.mrb[9].mxu0 }
 0x2d1   : > { %v1733_v41 = vpop.f32.mrb[9].mxu1  ;;  %v1712_v42 = vadd.f32 %v1711_v40, %v1710_v37  ;;  %v1713_v44 = vpop.f32.mrb[10].mxu0 }
 0x2d2   : > { %v1734_v43 = vadd.f32 %v1733_v41, %v1732_v38  ;;  %v1735_v45 = vpop.f32.mrb[10].mxu1  ;;  %v1714_v46 = vpop.f32.mrb[11].mxu0 }
 0x2d3   : > { %v1736_v47 = vpop.f32.mrb[11].mxu1  ;;  %v1384_v48 = vadd.f32 %v1712_v42, %v1570_v39 }
 0x2d5   : > { %v1424_v49 = vadd.f32 %v1734_v43, %v1384_v48 }
 0x2d7   : > { %v1430_v50 = vmul.f32 0.2, %v1424_v49  ;;  %vm1429_vm3 = vcmp.ge.f32.partialorder %v1424_v49, 0.0 }
 0x2d9   : > { %v1431_v52 = vsel %vm1429_vm3, %v1424_v49, %v1430_v50 }
 0x2da   : > { %v1433_v53 = vmul.f32 %v1432_v51, %v1431_v52 }
 0x2dc   : > { %v1435_v54 = vsel %vm1434_vm4, %v1433_v53, 0.0 }
 0x2dd   : > { %1436 = vadd.xlane.f32.xlu0 %v1435_v54 }
 0x36a   : > { %v1437_v55 = vpop.xlane.xlu0 %1436 }
 0x36b   : > { %v1438_v56 = vsel %vm1434_vm4, %v1437_v55, 0.0 }
 0x36c   : > { %v1439_v57 = vrot.slane %v1438_v56, 4 }
 0x36e   : > { %v1440_v58 = vadd.f32 %v1439_v57, %v1438_v56 }
 0x370   : > { %v1441_v59 = vrot.slane %v1440_v58, 2 }
 0x372   : > { %v1442_v60 = vadd.f32 %v1441_v59, %v1440_v58 }
 0x374   : > { %v1443_v61 = vrot.slane %v1442_v60, 1 }
 0x376   : > { %v1444_v63 = vadd.f32 %v1443_v61, %v1442_v60 }
 0x378   : > { %v1447_v0 = vadd.f32 %v1446_v62, %v1444_v63 }
 0x37a   : > { %1449 = vst.msk [vmem:[%s329_s19] sm:$0x1] %vm1448_vm5, %v1447_v0 }
 0x37b PF: > { %s20_s11 = sadd.s32 1, %s1849_s11  }
 0x37c   : > { %p17_p4 = scmp.ge.s32.totalorder %s20_s11, 4  }
 0x37e   :  { %19 = sbr.rel (!%p17_p4) target bundleno = 2 (0x2), region = 99 }

</bundles_post_ra>
